<compile_context>
chip_gen: v7x
topology: tpu7x:2x2x1
jax: 0.10.0
libtpu: 0.0.40
codegen_flags: <defaults>
</compile_context>

<pallas_src>
import jax
import jax.numpy as jnp
from jax.experimental import pallas as pl
from jax.experimental.pallas import tpu as pltpu


def _mlp_kernel(x_ref, w1_ref, b1_ref, w2_ref, b2_ref,
                mask1_ref, noise_ref, mask2_ref, o_ref):
    # linear1: bf16 MXU matmul, f32 accumulate; bias + relu in f32
    h = jnp.dot(x_ref[...], w1_ref[...], preferred_element_type=jnp.float32)
    h = jnp.maximum(h + b1_ref[...], 0.0)

    # dropout p=0.1 (keep mask pre-scaled by 1/0.9) + gaussian noise (std=0.01)
    h = h * mask1_ref[...] + noise_ref[...]

    # linear2: bf16 MXU matmul, f32 accumulate; bias + dropout p=0.1
    y = jnp.dot(h.astype(jnp.bfloat16), w2_ref[...],
                preferred_element_type=jnp.float32)
    y = (y + b2_ref[...]) * mask2_ref[...]

    o_ref[...] = y


def simple_triplet_network(x, params, key, *, training=True, block_b=8):
    """Forward pass. x: (B, C, H, W) float32 -> (B, output_size) float32."""
    B = x.shape[0]
    x_flat = x.reshape(B, -1)                              # glue: flatten(1)
    D = x_flat.shape[1]
    H = params["w1"].shape[1]
    O = params["w2"].shape[1]
    assert params["w1"].shape == (D, H)
    assert D % 128 == 0 and H % 128 == 0, "lane-aligned toy shapes assumed"

    lane = 128
    O_pad = ((O + lane - 1) // lane) * lane                # lane-dense output
    B_pad = ((B + block_b - 1) // block_b) * block_b       # sublane-aligned rows

    # --- randomness in the wrapper (see TODO above); masks carry the 1/0.9 scale ---
    if training:
        k1, k2, k3 = jax.random.split(key, 3)
        inv_keep = jnp.float32(1.0 / 0.9)
        mask1 = (jax.random.uniform(k1, (B_pad, H)) >= 0.1).astype(jnp.float32) * inv_keep
        noise = jax.random.normal(k2, (B_pad, H), jnp.float32) * jnp.float32(0.01)
        mask2 = (jax.random.uniform(k3, (B_pad, O_pad)) >= 0.1).astype(jnp.float32) * inv_keep
    else:
        mask1 = jnp.ones((B_pad, H), jnp.float32)
        noise = jnp.zeros((B_pad, H), jnp.float32)
        mask2 = jnp.ones((B_pad, O_pad), jnp.float32)

    # --- operand packing: bf16 matmul operands, f32 for biases / elementwise ---
    x_pad = jnp.zeros((B_pad, D), jnp.bfloat16).at[:B].set(x_flat.astype(jnp.bfloat16))
    w1 = params["w1"].astype(jnp.bfloat16)
    b1 = params["b1"].astype(jnp.float32).reshape(1, H)
    w2 = jnp.zeros((H, O_pad), jnp.bfloat16).at[:, :O].set(params["w2"].astype(jnp.bfloat16))
    b2 = jnp.zeros((1, O_pad), jnp.float32).at[:, :O].set(params["b2"].astype(jnp.float32))

    out = pl.pallas_call(
        _mlp_kernel,
        out_shape=jax.ShapeDtypeStruct((B_pad, O_pad), jnp.float32),
        grid=(B_pad // block_b,),
        in_specs=[
            pl.BlockSpec((block_b, D), lambda i: (i, 0)),      # x rows
            pl.BlockSpec((D, H), lambda i: (0, 0)),            # w1 (VMEM-resident)
            pl.BlockSpec((1, H), lambda i: (0, 0)),            # b1
            pl.BlockSpec((H, O_pad), lambda i: (0, 0)),        # w2 (VMEM-resident)
            pl.BlockSpec((1, O_pad), lambda i: (0, 0)),        # b2
            pl.BlockSpec((block_b, H), lambda i: (i, 0)),      # dropout mask 1
            pl.BlockSpec((block_b, H), lambda i: (i, 0)),      # gaussian noise
            pl.BlockSpec((block_b, O_pad), lambda i: (i, 0)),  # dropout mask 2
        ],
        out_specs=pl.BlockSpec((block_b, O_pad), lambda i: (i, 0)),
        compiler_params=pltpu.CompilerParams(
            dimension_semantics=("parallel",)),
    )(x_pad, w1, b1, w2, b2, mask1, noise, mask2)

    return out[:B, :O]


def triplet_forward(anchor, positive, negative, params, key, *, training=True):
    """Run the shared MLP on all three triplet branches with ONE pallas_call."""
    B = anchor.shape[0]
    stacked = jnp.concatenate([anchor, positive, negative], axis=0)
    out = simple_triplet_network(stacked, params, key, training=training)
    return out[:B], out[B:2 * B], out[2 * B:]


def init_params(key, in_features, hidden=512, out_features=4):
    """Deterministic init mimicking nn.Linear (uniform(-1/sqrt(fan_in), ...))."""
    k1, k2, k3, k4 = jax.random.split(key, 4)
    bound1 = 1.0 / jnp.sqrt(in_features)
    bound2 = 1.0 / jnp.sqrt(hidden)
    return {
        "w1": jax.random.uniform(k1, (in_features, hidden), jnp.float32,
                                 -bound1, bound1),
        "b1": jax.random.uniform(k2, (hidden,), jnp.float32, -bound1, bound1),
        "w2": jax.random.uniform(k3, (hidden, out_features), jnp.float32,
                                 -bound2, bound2),
        "b2": jax.random.uniform(k4, (out_features,), jnp.float32,
                                 -bound2, bound2),
    }


if __name__ == "__main__":
    key = jax.random.PRNGKey(0)
    kx, kp, kr = jax.random.split(key, 3)

    # input_shape = (4, 16, 16) -> CNN_outshape = 4*16*16 = 1024, output_size = 4
    B, C, Hs, Ws = 2, 4, 16, 16
    ka, kb, kc = jax.random.split(kx, 3)
    anchor = jax.random.normal(ka, (B, C, Hs, Ws), dtype=jnp.float32)
    positive = jax.random.normal(kb, (B, C, Hs, Ws), dtype=jnp.float32)
    negative = jax.random.normal(kc, (B, C, Hs, Ws), dtype=jnp.float32)

    params = init_params(kp, in_features=C * Hs * Ws, hidden=512, out_features=4)

    oa, op_, on = triplet_forward(anchor, positive, negative, params, kr)
    oa, op_, on = jax.block_until_ready((oa, op_, on))
    assert oa.shape == (B, 4) and oa.dtype == jnp.float32
    assert op_.shape == (B, 4) and on.shape == (B, 4)
    print("KERNEL_OK")
</pallas_src>

<mosaic_0001>
module attributes {stable_mosaic.version = 11 : i64} {
  func.func @_mlp_kernel(%arg0: i32, %arg1: memref<8x1024xbf16, #tpu.memory_space<vmem>>, %arg2: memref<1024x512xbf16, #tpu.memory_space<vmem>>, %arg3: memref<1x512xf32, #tpu.memory_space<vmem>>, %arg4: memref<512x128xbf16, #tpu.memory_space<vmem>>, %arg5: memref<1x128xf32, #tpu.memory_space<vmem>>, %arg6: memref<8x512xf32, #tpu.memory_space<vmem>>, %arg7: memref<8x512xf32, #tpu.memory_space<vmem>>, %arg8: memref<8x128xf32, #tpu.memory_space<vmem>>, %arg9: memref<8x128xf32, #tpu.memory_space<vmem>>) attributes {dimension_semantics = [#tpu.dimension_semantics<parallel>], iteration_bounds = array<i64: 1>, scalar_prefetch = 0 : i64, scratch_operands = 0 : i64, tpu.core_type = #tpu.core_type<tc>, window_params = [{transform_indices = @transform_0, window_bounds = array<i64: 8, 1024>}, {pipeline_mode = #tpu.pipeline_mode<synchronous>, transform_indices = @transform_1, window_bounds = array<i64: 1024, 512>}, {pipeline_mode = #tpu.pipeline_mode<synchronous>, transform_indices = @transform_2, window_bounds = array<i64: 1, 512>}, {pipeline_mode = #tpu.pipeline_mode<synchronous>, transform_indices = @transform_3, window_bounds = array<i64: 512, 128>}, {pipeline_mode = #tpu.pipeline_mode<synchronous>, transform_indices = @transform_4, window_bounds = array<i64: 1, 128>}, {transform_indices = @transform_5, window_bounds = array<i64: 8, 512>}, {transform_indices = @transform_6, window_bounds = array<i64: 8, 512>}, {transform_indices = @transform_7, window_bounds = array<i64: 8, 128>}, {transform_indices = @transform_8, window_bounds = array<i64: 8, 128>}]} {
    %c0 = arith.constant 0 : index
    %c0_0 = arith.constant 0 : index
    %0 = vector.load %arg1[%c0, %c0_0] : memref<8x1024xbf16, #tpu.memory_space<vmem>>, vector<8x1024xbf16>
    %c0_1 = arith.constant 0 : index
    %c0_2 = arith.constant 0 : index
    %1 = vector.load %arg2[%c0_1, %c0_2] : memref<1024x512xbf16, #tpu.memory_space<vmem>>, vector<1024x512xbf16>
    %cst = arith.constant dense<0.000000e+00> : vector<8x512xf32>
    %2 = tpu.matmul %0, %1, %cst {dimension_numbers = #tpu.dot_dimension_numbers<[1], [0], [0], [1], [0, 0, 1, 1], [], []>} : vector<8x1024xbf16>, vector<1024x512xbf16>, vector<8x512xf32> -> vector<8x512xf32>
    %c0_3 = arith.constant 0 : index
    %c0_4 = arith.constant 0 : index
    %3 = vector.load %arg3[%c0_3, %c0_4] : memref<1x512xf32, #tpu.memory_space<vmem>>, vector<1x512xf32>
    %4 = vector.broadcast %3 : vector<1x512xf32> to vector<8x512xf32>
    %5 = arith.addf %2, %4 : vector<8x512xf32>
    %cst_5 = arith.constant 0.000000e+00 : f32
    %6 = vector.broadcast %cst_5 : f32 to vector<8x512xf32>
    %7 = arith.maximumf %5, %6 : vector<8x512xf32>
    %c0_6 = arith.constant 0 : index
    %c0_7 = arith.constant 0 : index
    %8 = vector.load %arg6[%c0_6, %c0_7] : memref<8x512xf32, #tpu.memory_space<vmem>>, vector<8x512xf32>
    %9 = arith.mulf %7, %8 : vector<8x512xf32>
    %c0_8 = arith.constant 0 : index
    %c0_9 = arith.constant 0 : index
    %10 = vector.load %arg7[%c0_8, %c0_9] : memref<8x512xf32, #tpu.memory_space<vmem>>, vector<8x512xf32>
    %11 = arith.addf %9, %10 : vector<8x512xf32>
    %12 = arith.truncf %11 : vector<8x512xf32> to vector<8x512xbf16>
    %c0_10 = arith.constant 0 : index
    %c0_11 = arith.constant 0 : index
    %13 = vector.load %arg4[%c0_10, %c0_11] : memref<512x128xbf16, #tpu.memory_space<vmem>>, vector<512x128xbf16>
    %cst_12 = arith.constant dense<0.000000e+00> : vector<8x128xf32>
    %14 = tpu.matmul %12, %13, %cst_12 {dimension_numbers = #tpu.dot_dimension_numbers<[1], [0], [0], [1], [0, 0, 1, 1], [], []>} : vector<8x512xbf16>, vector<512x128xbf16>, vector<8x128xf32> -> vector<8x128xf32>
    %c0_13 = arith.constant 0 : index
    %c0_14 = arith.constant 0 : index
    %15 = vector.load %arg5[%c0_13, %c0_14] : memref<1x128xf32, #tpu.memory_space<vmem>>, vector<1x128xf32>
    %16 = vector.broadcast %15 : vector<1x128xf32> to vector<8x128xf32>
    %17 = arith.addf %14, %16 : vector<8x128xf32>
    %c0_15 = arith.constant 0 : index
    %c0_16 = arith.constant 0 : index
    %18 = vector.load %arg8[%c0_15, %c0_16] : memref<8x128xf32, #tpu.memory_space<vmem>>, vector<8x128xf32>
    %19 = arith.mulf %17, %18 : vector<8x128xf32>
    %c0_17 = arith.constant 0 : index
    %c0_18 = arith.constant 0 : index
    %20 = vector.load %arg9[%c0_17, %c0_18] : memref<8x128xf32, #tpu.memory_space<vmem>>, vector<8x128xf32>
    tpu.vector_store %arg9[%c0_17, %c0_18], %19 {strides = array<i32>} : memref<8x128xf32, #tpu.memory_space<vmem>>, vector<8x128xf32>,
    return
  }
  func.func @transform_0(%arg0: i32) -> (i32, i32) {
    %c0_i32 = arith.constant 0 : i32
    %c0_i32_0 = arith.constant 0 : i32
    return %arg0, %c0_i32 : i32, i32
  }
  func.func @transform_1(%arg0: i32) -> (i32, i32) {
    %c0_i32 = arith.constant 0 : i32
    %c0_i32_0 = arith.constant 0 : i32
    %c0_i32_1 = arith.constant 0 : i32
    return %c0_i32, %c0_i32_0 : i32, i32
  }
  func.func @transform_2(%arg0: i32) -> (i32, i32) {
    %c0_i32 = arith.constant 0 : i32
    %c0_i32_0 = arith.constant 0 : i32
    %c0_i32_1 = arith.constant 0 : i32
    return %c0_i32, %c0_i32_0 : i32, i32
  }
  func.func @transform_3(%arg0: i32) -> (i32, i32) {
    %c0_i32 = arith.constant 0 : i32
    %c0_i32_0 = arith.constant 0 : i32
    %c0_i32_1 = arith.constant 0 : i32
    return %c0_i32, %c0_i32_0 : i32, i32
  }
  func.func @transform_4(%arg0: i32) -> (i32, i32) {
    %c0_i32 = arith.constant 0 : i32
    %c0_i32_0 = arith.constant 0 : i32
    %c0_i32_1 = arith.constant 0 : i32
    return %c0_i32, %c0_i32_0 : i32, i32
  }
  func.func @transform_5(%arg0: i32) -> (i32, i32) {
    %c0_i32 = arith.constant 0 : i32
    %c0_i32_0 = arith.constant 0 : i32
    return %arg0, %c0_i32 : i32, i32
  }
  func.func @transform_6(%arg0: i32) -> (i32, i32) {
    %c0_i32 = arith.constant 0 : i32
    %c0_i32_0 = arith.constant 0 : i32
    return %arg0, %c0_i32 : i32, i32
  }
  func.func @transform_7(%arg0: i32) -> (i32, i32) {
    %c0_i32 = arith.constant 0 : i32
    %c0_i32_0 = arith.constant 0 : i32
    return %arg0, %c0_i32 : i32, i32
  }
  func.func @transform_8(%arg0: i32) -> (i32, i32) {
    %c0_i32 = arith.constant 0 : i32
    %c0_i32_0 = arith.constant 0 : i32
    return %arg0, %c0_i32 : i32, i32
  }
}

</mosaic_0001>

<bundles_post_ra>
// kernel: tpu_custom_call.1
= control target key start
LH: loop header
LB: loop body
LE: loop exit
PB: predicated region body
PF: predicated region fallthrough
CT: control target
= control target key end

     0   :  { %13 = vsyncpa [#allocation3], 0  ;;  %s3495_s0 = inlined_call_operand.hbm [shape: bf16[8,1024], index: 0, kind: input, shape index: {}]   ;;  %s3496_s1 = inlined_call_operand.hbm [shape: bf16[1024,512], index: 1, kind: input, shape index: {}]   ;;  %s3497_s2 = inlined_call_operand.vmem [shape: f32[1,512], index: 2, kind: input, shape index: {}]   ;;  %s3498_s3 = inlined_call_operand.hbm [shape: bf16[512,128], index: 3, kind: input, shape index: {}]   ;;  %s3499_s4 = inlined_call_operand.vmem [shape: f32[1,128], index: 4, kind: input, shape index: {}]   ;;  %s3500_s5 = inlined_call_operand.hbm [shape: f32[8,512], index: 5, kind: input, shape index: {}]   ;;  %s3501_s6 = inlined_call_operand.hbm [shape: f32[8,512], index: 6, kind: input, shape index: {}]   ;;  %s3502_s7 = inlined_call_operand.vmem [shape: f32[8,128], index: 7, kind: input, shape index: {}]   ;;  %s3503_s8 = inlined_call_operand.hbm [shape: f32[8,128], index: 8, kind: output, shape index: {}]  }
   0x1   :  { %14 = vsyncpa [#allocation6], 0 }
   0x2   :  { %15 = vsyncpa [#allocation9], 0 }
   0x3   :  { %16 = vsyncpa [#allocation4], 0  ;;  %s3341_s27 = smov [#allocation5]   ;;  %s3201_s9 = scalar_lea.hbm %s3496_s1, 32768 }
   0x4   :  { %s32_s28 = sshll.u32 %s3341_s27, 4  ;;  %p3202_p0 = scmp.ne.s32.totalorder %s3496_s1, %s3201_s9  ;;  %s33_s28 = int_to_ptr.vmem [resolvable:$true] %s32_s28 }
   0x5   :  { %p3205_p1 = scmp.lt.u32.totalorder %s3201_s9, %s3496_s1 }
   0x7   :  { %p3207_p2 = pnand %p3205_p1, %p3202_p0 }
   0x9   :  { %3210 = shalt.err (!%p3207_p2)
}
   0xa   :  { %s3211_s14 = scalar_lea.vmem %s33_s28, 32768  ;;  %p3216_p4 = scmp.lt.s32.totalorder %s33_s28, %s33_s28 }
   0xb   :  { %p3212_p3 = scmp.ne.s32.totalorder %s33_s28, %s3211_s14  ;;  %p3217_p5 = scmp.lt.s32.totalorder %s3211_s14, %s3211_s14 }
   0xd   :  { %p3218_p6 = por %p3217_p5, %p3216_p4 }
   0xf   :  { %p3219_p7 = pnand %p3218_p6, %p3212_p3 }
  0x11   :  { %3222 = shalt.err (!%p3219_p7)
}
  0x12   :  { %s3342_s15 = smov 256   ;;  %s3343_s16 = smov 16  }
  0x13   :  { %38 = dma.hbm_to_vmem [thread:$0]  %s3496_s1, 32768, %s33_s28, [#allocation6], %s3342_s15, %s3342_s15, %s3343_s16  }
  0x14   :  { %s3344_s19 = smov [#allocation8]   ;;  %s3345_s21 = smov [#allocation2]  }
  0x15   :  { %s61_s20 = sshll.u32 %s3344_s19, 4  ;;  %s23_s22 = sshll.u32 %s3345_s21, 4  ;;  %s62_s20 = int_to_ptr.vmem [resolvable:$true] %s61_s20  ;;  %s24_s22 = int_to_ptr.vmem [resolvable:$true] %s23_s22 }
  0x16   :  { %s3223_s25 = scalar_lea.hbm %s3500_s5, 512 }
  0x17   :  { %p3224_p8 = scmp.ne.s32.totalorder %s3500_s5, %s3223_s25  ;;  %p3227_p9 = scmp.lt.u32.totalorder %s3223_s25, %s3500_s5 }
  0x19   :  { %p3229_p10 = pnand %p3227_p9, %p3224_p8 }
  0x1b   :  { %3232 = shalt.err (!%p3229_p10)
}
  0x1c   :  { %s3233_s1 = scalar_lea.vmem %s62_s20, 512  ;;  %p3238_p12 = scmp.lt.s32.totalorder %s62_s20, %s62_s20 }
  0x1d   :  { %p3234_p11 = scmp.ne.s32.totalorder %s62_s20, %s3233_s1  ;;  %p3239_p13 = scmp.lt.s32.totalorder %s3233_s1, %s3233_s1 }
  0x1f   :  { %p3240_p0 = por %p3239_p13, %p3238_p12 }
  0x21   :  { %p3241_p1 = pnand %p3240_p0, %p3234_p11 }
  0x23   :  { %3244 = shalt.err (!%p3241_p1)
}
  0x24   :  { %64 = dma.hbm_to_vmem [thread:$0]  %s3500_s5, 512, %s62_s20, [#allocation9]  }
  0x25   :  { %s3245_s12 = scalar_lea.hbm %s3495_s0, 512 }
  0x26   :  { %p3246_p2 = scmp.ne.s32.totalorder %s3495_s0, %s3245_s12  ;;  %p3249_p3 = scmp.lt.u32.totalorder %s3245_s12, %s3495_s0 }
  0x28   :  { %p3251_p4 = pnand %p3249_p3, %p3246_p2 }
  0x2a   :  { %3254 = shalt.err (!%p3251_p4)
}
  0x2b   :  { %s3255_s17 = scalar_lea.vmem %s24_s22, 512  ;;  %p3260_p6 = scmp.lt.s32.totalorder %s24_s22, %s24_s22 }
  0x2c   :  { %p3256_p5 = scmp.ne.s32.totalorder %s24_s22, %s3255_s17  ;;  %p3261_p7 = scmp.lt.s32.totalorder %s3255_s17, %s3255_s17 }
  0x2e   :  { %p3262_p8 = por %p3261_p7, %p3260_p6 }
  0x30   :  { %p3263_p9 = pnand %p3262_p8, %p3256_p5 }
  0x32   :  { %3266 = shalt.err (!%p3263_p9)
}
  0x33   :  { %26 = dma.hbm_to_vmem [thread:$0]  %s3495_s0, 512, %s24_s22, [#allocation3]  }
  0x34   :  { %s3346_s19 = smov [#allocation7]   ;;  %s3267_s24 = scalar_lea.hbm %s3498_s3, 4096 }
  0x35   :  { %s46_s20 = sshll.u32 %s3346_s19, 4  ;;  %p3268_p10 = scmp.ne.s32.totalorder %s3498_s3, %s3267_s24  ;;  %s47_s20 = int_to_ptr.vmem [resolvable:$true] %s46_s20 }
  0x36   :  { %p3271_p11 = scmp.lt.u32.totalorder %s3267_s24, %s3498_s3 }
  0x38   :  { %p3273_p12 = pnand %p3271_p11, %p3268_p10 }
  0x3a   :  { %3276 = shalt.err (!%p3273_p12)
}
  0x3b   :  { %s3277_s30 = scalar_lea.vmem %s47_s20, 4096  ;;  %p3282_p0 = scmp.lt.s32.totalorder %s47_s20, %s47_s20 }
  0x3c   :  { %p3278_p13 = scmp.ne.s32.totalorder %s47_s20, %s3277_s30  ;;  %p3283_p1 = scmp.lt.s32.totalorder %s3277_s30, %s3277_s30 }
  0x3e   :  { %p3284_p2 = por %p3283_p1, %p3282_p0 }
  0x40   :  { %p3285_p3 = pnand %p3284_p2, %p3278_p13 }
  0x42   :  { %3288 = shalt.err (!%p3285_p3)
}
  0x43   :  { %s3347_s0 = smov 64   ;;  %s3348_s22 = smov 4  }
  0x44   :  { %52 = dma.hbm_to_vmem [thread:$0]  %s3498_s3, 4096, %s47_s20, [#allocation6], %s3347_s0, %s3347_s0, %s3348_s22  }
  0x45   :  { %s3349_s9 = smov [#allocation10]   ;;  %s3289_s13 = scalar_lea.hbm %s3501_s6, 512 }
  0x46   :  { %s71_s10 = sshll.u32 %s3349_s9, 4  ;;  %p3290_p4 = scmp.ne.s32.totalorder %s3501_s6, %s3289_s13  ;;  %s72_s10 = int_to_ptr.vmem [resolvable:$true] %s71_s10 }
  0x47   :  { %p3293_p5 = scmp.lt.u32.totalorder %s3289_s13, %s3501_s6 }
  0x49   :  { %p3295_p6 = pnand %p3293_p5, %p3290_p4 }
  0x4b   :  { %3298 = shalt.err (!%p3295_p6)
}
  0x4c   :  { %s3299_s5 = scalar_lea.vmem %s72_s10, 512  ;;  %p3304_p8 = scmp.lt.s32.totalorder %s72_s10, %s72_s10 }
  0x4d   :  { %p3300_p7 = scmp.ne.s32.totalorder %s72_s10, %s3299_s5  ;;  %p3305_p9 = scmp.lt.s32.totalorder %s3299_s5, %s3299_s5 }
  0x4f   :  { %p3306_p10 = por %p3305_p9, %p3304_p8 }
  0x51   :  { %p3307_p11 = pnand %p3306_p10, %p3300_p7 }
  0x53   :  { %3310 = shalt.err (!%p3307_p11)
}
  0x54   :  { %74 = dma.hbm_to_vmem [thread:$0]  %s3501_s6, 512, %s72_s10, [#allocation9]  }
  0x55   :  { %3333 = dma.done.wait [#allocation3], 512  }
  0x56   :  { %3334 = vsyncadd [#allocation3], 4294966784 }
  0x57   :  { %3335 = dma.done.wait [#allocation6], 36864  }
  0x58   :  { %3336 = vsyncadd [#allocation6], 4294930432 }
  0x59   :  { %3337 = dma.done.wait [#allocation9], 1024  }
  0x5a   :  { %3338 = vsyncadd [#allocation9], 4294966272  ;;  %v2777_v0 = vld [vmem:[#allocation5 + $0x4] ss:$16 sps:$4 sm:$0xff]   ;;  %v2779_v1 = vld [vmem:[#allocation5 + $0xc] ss:$16 sps:$4 sm:$0xff]  }
  0x5b   :  { %1683 = vmatprep.subr.bf16.mxu0 %v2777_v0  ;;  %v2781_v2 = vld [vmem:[#allocation5] ss:$16 sps:$4 sm:$0xff]   ;;  %v2782_v3 = vld [vmem:[#allocation5 + $0x8] ss:$16 sps:$4 sm:$0xff]   ;;  %1847 = vmatprep.subr.bf16.mxu1 %v2779_v1  ;;  %v2783_v4 = vld [vmem:[#allocation5 + $0x24] ss:$16 sps:$4 sm:$0xff]  }
  0x5c   :  { %1684 = vmatpush1.bf16.msra.mxu0 %v2781_v2  ;;  %1848 = vmatpush1.bf16.msra.mxu1 %v2782_v3  ;;  %v2785_v5 = vld [vmem:[#allocation5 + $0x2c] ss:$16 sps:$4 sm:$0xff]   ;;  %v2787_v6 = vld [vmem:[#allocation5 + $0x20] ss:$16 sps:$4 sm:$0xff]   ;;  %v2788_v7 = vld [vmem:[#allocation5 + $0x28] ss:$16 sps:$4 sm:$0xff]  }
  0x5d   :  { %1685 = vmatprep.subr.bf16.mxu0 %v2783_v4  ;;  %1849 = vmatprep.subr.bf16.mxu1 %v2785_v5  ;;  %v2789_v8 = vld [vmem:[#allocation5 + $0x44] ss:$16 sps:$4 sm:$0xff]   ;;  %v2791_v9 = vld [vmem:[#allocation5 + $0x4c] ss:$16 sps:$4 sm:$0xff]   ;;  %v2793_v10 = vld [vmem:[#allocation5 + $0x40] ss:$16 sps:$4 sm:$0xff]  }
  0x5e   :  { %v2794_v11 = vld [vmem:[#allocation5 + $0x48] ss:$16 sps:$4 sm:$0xff]   ;;  %v2795_v12 = vld [vmem:[#allocation5 + $0x64] ss:$16 sps:$4 sm:$0xff]   ;;  %v2797_v13 = vld [vmem:[#allocation5 + $0x6c] ss:$16 sps:$4 sm:$0xff]  }
  0x5f   :  { %v2799_v14 = vld [vmem:[#allocation5 + $0x60] ss:$16 sps:$4 sm:$0xff]   ;;  %v2800_v15 = vld [vmem:[#allocation5 + $0x68] ss:$16 sps:$4 sm:$0xff]   ;;  %v2801_v16 = vld [vmem:[#allocation5 + $0x84] ss:$16 sps:$4 sm:$0xff]  }
  0x60   :  { %1686 = vmatpush1.bf16.msra.mxu0 %v2787_v6  ;;  %1850 = vmatpush1.bf16.msra.mxu1 %v2788_v7  ;;  %v2803_v17 = vld [vmem:[#allocation5 + $0x8c] ss:$16 sps:$4 sm:$0xff]   ;;  %v2805_v18 = vld [vmem:[#allocation5 + $0x80] ss:$16 sps:$4 sm:$0xff]   ;;  %v2806_v19 = vld [vmem:[#allocation5 + $0x88] ss:$16 sps:$4 sm:$0xff]  }
  0x61   :  { %1687 = vmatprep.subr.bf16.mxu0 %v2789_v8  ;;  %1851 = vmatprep.subr.bf16.mxu1 %v2791_v9  ;;  %v2807_v20 = vld [vmem:[#allocation5 + $0xa4] ss:$16 sps:$4 sm:$0xff]   ;;  %v2809_v21 = vld [vmem:[#allocation5 + $0xac] ss:$16 sps:$4 sm:$0xff]   ;;  %v2811_v22 = vld [vmem:[#allocation5 + $0xa0] ss:$16 sps:$4 sm:$0xff]  }
  0x62   :  { %v2812_v23 = vld [vmem:[#allocation5 + $0xa8] ss:$16 sps:$4 sm:$0xff]   ;;  %v2813_v24 = vld [vmem:[#allocation5 + $0xc4] ss:$16 sps:$4 sm:$0xff]   ;;  %v2815_v25 = vld [vmem:[#allocation5 + $0xcc] ss:$16 sps:$4 sm:$0xff]  }
  0x63   :  { %v2817_v26 = vld [vmem:[#allocation5 + $0xc0] ss:$16 sps:$4 sm:$0xff]   ;;  %v2818_v27 = vld [vmem:[#allocation5 + $0xc8] ss:$16 sps:$4 sm:$0xff]   ;;  %v2819_v28 = vld [vmem:[#allocation5 + $0xe4] ss:$16 sps:$4 sm:$0xff]  }
  0x64   :  { %1688 = vmatpush1.bf16.msra.mxu0 %v2793_v10  ;;  %1852 = vmatpush1.bf16.msra.mxu1 %v2794_v11  ;;  %v2821_v29 = vld [vmem:[#allocation5 + $0xec] ss:$16 sps:$4 sm:$0xff]   ;;  %v2823_v30 = vld [vmem:[#allocation5 + $0xe0] ss:$16 sps:$4 sm:$0xff]   ;;  %v2824_v31 = vld [vmem:[#allocation5 + $0xe8] ss:$16 sps:$4 sm:$0xff]  }
  0x65   :  { %1689 = vmatprep.subr.bf16.mxu0 %v2795_v12  ;;  %1853 = vmatprep.subr.bf16.mxu1 %v2797_v13  ;;  %v2825_v32 = vld [vmem:[#allocation5 + $0x104] ss:$16 sps:$4 sm:$0xff]   ;;  %v2827_v33 = vld [vmem:[#allocation5 + $0x10c] ss:$16 sps:$4 sm:$0xff]   ;;  %v2829_v34 = vld [vmem:[#allocation5 + $0x100] ss:$16 sps:$4 sm:$0xff]  }
  0x66   :  { %v2830_v35 = vld [vmem:[#allocation5 + $0x108] ss:$16 sps:$4 sm:$0xff]   ;;  %v2831_v36 = vld [vmem:[#allocation5 + $0x124] ss:$16 sps:$4 sm:$0xff]   ;;  %v2833_v37 = vld [vmem:[#allocation5 + $0x12c] ss:$16 sps:$4 sm:$0xff]  }
  0x67   :  { %v2835_v38 = vld [vmem:[#allocation5 + $0x120] ss:$16 sps:$4 sm:$0xff]   ;;  %v2836_v39 = vld [vmem:[#allocation5 + $0x128] ss:$16 sps:$4 sm:$0xff]   ;;  %v2837_v40 = vld [vmem:[#allocation5 + $0x144] ss:$16 sps:$4 sm:$0xff]  }
  0x68   :  { %1690 = vmatpush1.bf16.msra.mxu0 %v2799_v14  ;;  %1854 = vmatpush1.bf16.msra.mxu1 %v2800_v15  ;;  %v2839_v41 = vld [vmem:[#allocation5 + $0x14c] ss:$16 sps:$4 sm:$0xff]   ;;  %v2841_v42 = vld [vmem:[#allocation5 + $0x140] ss:$16 sps:$4 sm:$0xff]   ;;  %v2842_v43 = vld [vmem:[#allocation5 + $0x148] ss:$16 sps:$4 sm:$0xff]  }
  0x69   :  { %1691 = vmatprep.subr.bf16.mxu0 %v2801_v16  ;;  %1855 = vmatprep.subr.bf16.mxu1 %v2803_v17  ;;  %v2843_v44 = vld [vmem:[#allocation5 + $0x164] ss:$16 sps:$4 sm:$0xff]   ;;  %v2845_v45 = vld [vmem:[#allocation5 + $0x16c] ss:$16 sps:$4 sm:$0xff]   ;;  %v2847_v47 = vld [vmem:[#allocation5 + $0x160] ss:$16 sps:$4 sm:$0xff]  }
  0x6a   :  { %v93_v46 = vld [vmem:[#allocation2] sm:$0xff]  ;;  %v2848_v49 = vld [vmem:[#allocation5 + $0x168] ss:$16 sps:$4 sm:$0xff]   ;;  %v2851_v51 = vld [vmem:[#allocation5 + $0x18c] ss:$16 sps:$4 sm:$0xff]   ;;  %s3350_s24 = smov [#allocation11]  }
  0x6b   :  { %v2399_v48 = vcombine.high %v93_v46, %v93_v46  ;;  %v2849_v50 = vld [vmem:[#allocation5 + $0x184] ss:$16 sps:$4 sm:$0xff]   ;;  %v2853_v52 = vld [vmem:[#allocation5 + $0x180] ss:$16 sps:$4 sm:$0xff]   ;;  %v2854_v53 = vld [vmem:[#allocation5 + $0x188] ss:$16 sps:$4 sm:$0xff]   ;;  %v2398_v4 = vcombine.low %v93_v46, %v93_v46 }
  0x6c   :  { %1692 = vmatpush1.bf16.msra.mxu0 %v2805_v18  ;;  %1856 = vmatpush1.bf16.msra.mxu1 %v2806_v19  ;;  %v2855_v54 = vld [vmem:[#allocation5 + $0x1a4] ss:$16 sps:$4 sm:$0xff]   ;;  %v2857_v55 = vld [vmem:[#allocation5 + $0x1ac] ss:$16 sps:$4 sm:$0xff]   ;;  %v2859_v56 = vld [vmem:[#allocation5 + $0x1a0] ss:$16 sps:$4 sm:$0xff]  }
  0x6d   :  { %1693 = vmatprep.subr.bf16.mxu0 %v2807_v20  ;;  %1857 = vmatprep.subr.bf16.mxu1 %v2809_v21  ;;  %v2860_v57 = vld [vmem:[#allocation5 + $0x1a8] ss:$16 sps:$4 sm:$0xff]   ;;  %v2861_v58 = vld [vmem:[#allocation5 + $0x1c4] ss:$16 sps:$4 sm:$0xff]   ;;  %v2863_v59 = vld [vmem:[#allocation5 + $0x1cc] ss:$16 sps:$4 sm:$0xff]  }
  0x6e   :  { %1715 = vmatprep.mubr.bf16.mxu0 %v2399_v48  ;;  %1879 = vmatprep.mubr.bf16.mxu1 %v2399_v48  ;;  %v2865_v60 = vld [vmem:[#allocation5 + $0x1c0] ss:$16 sps:$4 sm:$0xff]   ;;  %v2866_v61 = vld [vmem:[#allocation5 + $0x1c8] ss:$16 sps:$4 sm:$0xff]   ;;  %v2867_v62 = vld [vmem:[#allocation5 + $0x1e4] ss:$16 sps:$4 sm:$0xff]  }
  0x6f   :  { %v2869_v63 = vld [vmem:[#allocation5 + $0x1ec] ss:$16 sps:$4 sm:$0xff]   ;;  %v2871_v0 = vld [vmem:[#allocation5 + $0x1e0] ss:$16 sps:$4 sm:$0xff]   ;;  %v2872_v1 = vld [vmem:[#allocation5 + $0x1e8] ss:$16 sps:$4 sm:$0xff]  }
  0x70   :  { %1694 = vmatpush1.bf16.msra.mxu0 %v2811_v22  ;;  %1858 = vmatpush1.bf16.msra.mxu1 %v2812_v23  ;;  %v2877_v2 = vld [vmem:[#allocation5 + $0x204] ss:$16 sps:$4 sm:$0xff]   ;;  %v2880_v3 = vld [vmem:[#allocation5 + $0x20c] ss:$16 sps:$4 sm:$0xff]   ;;  %v2875_v5 = vld [vmem:[#allocation5 + $0x200] ss:$16 sps:$4 sm:$0xff]  }
  0x71   :  { %1695 = vmatprep.subr.bf16.mxu0 %v2813_v24  ;;  %1859 = vmatprep.subr.bf16.mxu1 %v2815_v25  ;;  %v2878_v6 = vld [vmem:[#allocation5 + $0x208] ss:$16 sps:$4 sm:$0xff]   ;;  %v2883_v7 = vld [vmem:[#allocation5 + $0x224] ss:$16 sps:$4 sm:$0xff]   ;;  %v2886_v8 = vld [vmem:[#allocation5 + $0x22c] ss:$16 sps:$4 sm:$0xff]  }
  0x72   :  { %v2881_v9 = vld [vmem:[#allocation5 + $0x220] ss:$16 sps:$4 sm:$0xff]   ;;  %v2884_v10 = vld [vmem:[#allocation5 + $0x228] ss:$16 sps:$4 sm:$0xff]   ;;  %v2889_v11 = vld [vmem:[#allocation5 + $0x244] ss:$16 sps:$4 sm:$0xff]  }
  0x73   :  { %v2892_v12 = vld [vmem:[#allocation5 + $0x24c] ss:$16 sps:$4 sm:$0xff]   ;;  %v2887_v13 = vld [vmem:[#allocation5 + $0x240] ss:$16 sps:$4 sm:$0xff]   ;;  %v2890_v14 = vld [vmem:[#allocation5 + $0x248] ss:$16 sps:$4 sm:$0xff]  }
  0x74   :  { %1696 = vmatpush1.bf16.msra.mxu0 %v2817_v26  ;;  %1860 = vmatpush1.bf16.msra.mxu1 %v2818_v27  ;;  %v2895_v15 = vld [vmem:[#allocation5 + $0x264] ss:$16 sps:$4 sm:$0xff]   ;;  %v2898_v16 = vld [vmem:[#allocation5 + $0x26c] ss:$16 sps:$4 sm:$0xff]   ;;  %v2893_v17 = vld [vmem:[#allocation5 + $0x260] ss:$16 sps:$4 sm:$0xff]  }
  0x75   :  { %1697 = vmatprep.subr.bf16.mxu0 %v2819_v28  ;;  %1861 = vmatprep.subr.bf16.mxu1 %v2821_v29  ;;  %v2896_v18 = vld [vmem:[#allocation5 + $0x268] ss:$16 sps:$4 sm:$0xff]   ;;  %v2901_v19 = vld [vmem:[#allocation5 + $0x284] ss:$16 sps:$4 sm:$0xff]   ;;  %v2904_v20 = vld [vmem:[#allocation5 + $0x28c] ss:$16 sps:$4 sm:$0xff]  }
  0x76   :  { %v2899_v21 = vld [vmem:[#allocation5 + $0x280] ss:$16 sps:$4 sm:$0xff]   ;;  %v2902_v22 = vld [vmem:[#allocation5 + $0x288] ss:$16 sps:$4 sm:$0xff]   ;;  %v2907_v23 = vld [vmem:[#allocation5 + $0x2a4] ss:$16 sps:$4 sm:$0xff]  }
  0x77   :  { %v2910_v24 = vld [vmem:[#allocation5 + $0x2ac] ss:$16 sps:$4 sm:$0xff]   ;;  %v2905_v25 = vld [vmem:[#allocation5 + $0x2a0] ss:$16 sps:$4 sm:$0xff]   ;;  %v2908_v26 = vld [vmem:[#allocation5 + $0x2a8] ss:$16 sps:$4 sm:$0xff]  }
  0x78   :  { %1698 = vmatpush1.bf16.msra.mxu0 %v2823_v30  ;;  %1862 = vmatpush1.bf16.msra.mxu1 %v2824_v31  ;;  %v2913_v27 = vld [vmem:[#allocation5 + $0x2c4] ss:$16 sps:$4 sm:$0xff]   ;;  %v2916_v28 = vld [vmem:[#allocation5 + $0x2cc] ss:$16 sps:$4 sm:$0xff]   ;;  %v2911_v31 = vld [vmem:[#allocation5 + $0x2c0] ss:$16 sps:$4 sm:$0xff]  }
  0x79   :  { %1699 = vmatprep.subr.bf16.mxu0 %v2825_v32  ;;  %1863 = vmatprep.subr.bf16.mxu1 %v2827_v33  ;;  %v3456_v29 = vld [vmem:[#allocation2 + $0x8] sm:$0xff]  ;;  %v2919_v33 = vld [vmem:[#allocation5 + $0x2e4] ss:$16 sps:$4 sm:$0xff]   ;;  %s2387_s25 = sshll.u32 %s3350_s24, 4  ;;  %s2388_s25 = int_to_ptr.vmem [resolvable:$true] %s2387_s25 }
  0x7a   :  { %v2401_v30 = vcombine.high %v3456_v29, %v3456_v29  ;;  %v2914_v32 = vld [vmem:[#allocation5 + $0x2c8] ss:$16 sps:$4 sm:$0xff]   ;;  %v2940_v46 = vld [vmem:[#allocation5 + $0x34c] ss:$16 sps:$4 sm:$0xff]   ;;  %p3316_p13 = scmp.lt.s32.totalorder %s2388_s25, %s2388_s25 }
  0x7b   :  { %v2938_v48 = vld [vmem:[#allocation5 + $0x348] ss:$16 sps:$4 sm:$0xff]  }
  0x7c   :  { %1700 = vmatpush1.bf16.msra.mxu0 %v2829_v34  ;;  %1864 = vmatpush1.bf16.msra.mxu1 %v2830_v35  ;;  %v2922_v34 = vld [vmem:[#allocation5 + $0x2ec] ss:$16 sps:$4 sm:$0xff]   ;;  %v2917_v35 = vld [vmem:[#allocation5 + $0x2e0] ss:$16 sps:$4 sm:$0xff]  }
  0x7d   :  { %1701 = vmatprep.subr.bf16.mxu0 %v2831_v36  ;;  %1865 = vmatprep.subr.bf16.mxu1 %v2833_v37  ;;  %v2920_v36 = vld [vmem:[#allocation5 + $0x2e8] ss:$16 sps:$4 sm:$0xff]   ;;  %v2925_v37 = vld [vmem:[#allocation5 + $0x304] ss:$16 sps:$4 sm:$0xff]  }
  0x80   :  { %1702 = vmatpush1.bf16.msra.mxu0 %v2835_v38  ;;  %1866 = vmatpush1.bf16.msra.mxu1 %v2836_v39  ;;  %v2928_v38 = vld [vmem:[#allocation5 + $0x30c] ss:$16 sps:$4 sm:$0xff]   ;;  %v2923_v39 = vld [vmem:[#allocation5 + $0x300] ss:$16 sps:$4 sm:$0xff]  }
  0x81   :  { %1703 = vmatprep.subr.bf16.mxu0 %v2837_v40  ;;  %1867 = vmatprep.subr.bf16.mxu1 %v2839_v41  ;;  %v2926_v40 = vld [vmem:[#allocation5 + $0x308] ss:$16 sps:$4 sm:$0xff]   ;;  %v2931_v41 = vld [vmem:[#allocation5 + $0x324] ss:$16 sps:$4 sm:$0xff]  }
  0x84   :  { %1704 = vmatpush1.bf16.msra.mxu0 %v2841_v42  ;;  %1868 = vmatpush1.bf16.msra.mxu1 %v2842_v43  ;;  %v2934_v42 = vld [vmem:[#allocation5 + $0x32c] ss:$16 sps:$4 sm:$0xff]   ;;  %v2929_v43 = vld [vmem:[#allocation5 + $0x320] ss:$16 sps:$4 sm:$0xff]  }
  0x85   :  { %1705 = vmatprep.subr.bf16.mxu0 %v2843_v44  ;;  %1869 = vmatprep.subr.bf16.mxu1 %v2845_v45  ;;  %v2932_v44 = vld [vmem:[#allocation5 + $0x328] ss:$16 sps:$4 sm:$0xff]   ;;  %v2937_v45 = vld [vmem:[#allocation5 + $0x344] ss:$16 sps:$4 sm:$0xff]  }
  0x88   :  { %1706 = vmatpush1.bf16.msra.mxu0 %v2847_v47  ;;  %1870 = vmatpush1.bf16.msra.mxu1 %v2848_v49  ;;  %v2935_v47 = vld [vmem:[#allocation5 + $0x340] ss:$16 sps:$4 sm:$0xff]   ;;  %v2943_v49 = vld [vmem:[#allocation5 + $0x364] ss:$16 sps:$4 sm:$0xff]  }
  0x89   :  { %1707 = vmatprep.subr.bf16.mxu0 %v2849_v50  ;;  %1871 = vmatprep.subr.bf16.mxu1 %v2851_v51  ;;  %v2946_v50 = vld [vmem:[#allocation5 + $0x36c] ss:$16 sps:$4 sm:$0xff]   ;;  %v2941_v51 = vld [vmem:[#allocation5 + $0x360] ss:$16 sps:$4 sm:$0xff]  }
  0x8c   :  { %1708 = vmatpush1.bf16.msra.mxu0 %v2853_v52  ;;  %1872 = vmatpush1.bf16.msra.mxu1 %v2854_v53  ;;  %v2944_v52 = vld [vmem:[#allocation5 + $0x368] ss:$16 sps:$4 sm:$0xff]   ;;  %v2949_v53 = vld [vmem:[#allocation5 + $0x384] ss:$16 sps:$4 sm:$0xff]  }
  0x8d   :  { %1709 = vmatprep.subr.bf16.mxu0 %v2855_v54  ;;  %1873 = vmatprep.subr.bf16.mxu1 %v2857_v55  ;;  %v2952_v54 = vld [vmem:[#allocation5 + $0x38c] ss:$16 sps:$4 sm:$0xff]   ;;  %v2947_v55 = vld [vmem:[#allocation5 + $0x380] ss:$16 sps:$4 sm:$0xff]  }
  0x90   :  { %1710 = vmatpush1.bf16.msra.mxu0 %v2859_v56  ;;  %1874 = vmatpush1.bf16.msra.mxu1 %v2860_v57  ;;  %v2950_v56 = vld [vmem:[#allocation5 + $0x388] ss:$16 sps:$4 sm:$0xff]   ;;  %v2955_v57 = vld [vmem:[#allocation5 + $0x3a4] ss:$16 sps:$4 sm:$0xff]  }
  0x91   :  { %1711 = vmatprep.subr.bf16.mxu0 %v2861_v58  ;;  %1875 = vmatprep.subr.bf16.mxu1 %v2863_v59  ;;  %v2958_v58 = vld [vmem:[#allocation5 + $0x3ac] ss:$16 sps:$4 sm:$0xff]   ;;  %v2953_v59 = vld [vmem:[#allocation5 + $0x3a0] ss:$16 sps:$4 sm:$0xff]  }
  0x94   :  { %1712 = vmatpush1.bf16.msra.mxu0 %v2865_v60  ;;  %1876 = vmatpush1.bf16.msra.mxu1 %v2866_v61  ;;  %v2956_v60 = vld [vmem:[#allocation5 + $0x3a8] ss:$16 sps:$4 sm:$0xff]   ;;  %v2961_v61 = vld [vmem:[#allocation5 + $0x3c4] ss:$16 sps:$4 sm:$0xff]  }
  0x95   :  { %1713 = vmatprep.subr.bf16.mxu0 %v2867_v62  ;;  %1877 = vmatprep.subr.bf16.mxu1 %v2869_v63  ;;  %v2964_v62 = vld [vmem:[#allocation5 + $0x3cc] ss:$16 sps:$4 sm:$0xff]   ;;  %v2959_v63 = vld [vmem:[#allocation5 + $0x3c0] ss:$16 sps:$4 sm:$0xff]  }
  0x98   :  { %1714 = vmatpush1.bf16.msra.mxu0 %v2871_v0  ;;  %1878 = vmatpush1.bf16.msra.mxu1 %v2872_v1  ;;  %v2962_v0 = vld [vmem:[#allocation5 + $0x3c8] ss:$16 sps:$4 sm:$0xff]   ;;  %v2967_v1 = vld [vmem:[#allocation5 + $0x3e4] ss:$16 sps:$4 sm:$0xff]  }
  0x99   :  { %1724 = vmatprep.subr.bf16.mxu0 %v2877_v2  ;;  %1888 = vmatprep.subr.bf16.mxu1 %v2880_v3  ;;  %v2970_v2 = vld [vmem:[#allocation5 + $0x3ec] ss:$16 sps:$4 sm:$0xff]   ;;  %v2965_v3 = vld [vmem:[#allocation5 + $0x3e0] ss:$16 sps:$4 sm:$0xff]  }
  0x9b   :  { %1716 = vmatmul.mubr.bf16.vlgmr.msra.gmra.mrb[0].mxu0 %v2398_v4  ;;  %1880 = vmatmul.mubr.bf16.vlgmr.msra.gmra.mrb[0].mxu1 %v2398_v4  ;;  %v2968_v4 = vld [vmem:[#allocation5 + $0x3e8] ss:$16 sps:$4 sm:$0xff]  }
  0x9c   :  { %1725 = vmatpush1.bf16.msra.mxu0 %v2875_v5  ;;  %1889 = vmatpush1.bf16.msra.mxu1 %v2878_v6  ;;  %v2975_v5 = vld [vmem:[#allocation5 + $0x404] ss:$16 sps:$4 sm:$0xff]   ;;  %v2978_v6 = vld [vmem:[#allocation5 + $0x40c] ss:$16 sps:$4 sm:$0xff]  }
  0x9d   :  { %1726 = vmatprep.subr.bf16.mxu0 %v2883_v7  ;;  %1890 = vmatprep.subr.bf16.mxu1 %v2886_v8  ;;  %v2400_v7 = vcombine.low %v3456_v29, %v3456_v29  ;;  %v2973_v8 = vld [vmem:[#allocation5 + $0x400] ss:$16 sps:$4 sm:$0xff]   ;;  %v3008_v29 = vld [vmem:[#allocation5 + $0x4ac] ss:$16 sps:$4 sm:$0xff]  }
  0x9e   :  { %1756 = vmatprep.mubr.bf16.mxu0 %v2401_v30  ;;  %1920 = vmatprep.mubr.bf16.mxu1 %v2401_v30  ;;  %v3003_v30 = vld [vmem:[#allocation5 + $0x4a0] ss:$16 sps:$4 sm:$0xff]  }
  0xa0   :  { %1727 = vmatpush1.bf16.msra.mxu0 %v2881_v9  ;;  %1891 = vmatpush1.bf16.msra.mxu1 %v2884_v10  ;;  %v2976_v9 = vld [vmem:[#allocation5 + $0x408] ss:$16 sps:$4 sm:$0xff]   ;;  %v2981_v10 = vld [vmem:[#allocation5 + $0x424] ss:$16 sps:$4 sm:$0xff]  }
  0xa1   :  { %1728 = vmatprep.subr.bf16.mxu0 %v2889_v11  ;;  %1892 = vmatprep.subr.bf16.mxu1 %v2892_v12  ;;  %v3462_v11 = vld [vmem:[#allocation2 + $0x10] sm:$0xff]  ;;  %v2984_v12 = vld [vmem:[#allocation5 + $0x42c] ss:$16 sps:$4 sm:$0xff]  }
  0xa4   :  { %1729 = vmatpush1.bf16.msra.mxu0 %v2887_v13  ;;  %1893 = vmatpush1.bf16.msra.mxu1 %v2890_v14  ;;  %v2403_v13 = vcombine.high %v3462_v11, %v3462_v11  ;;  %v2979_v14 = vld [vmem:[#allocation5 + $0x420] ss:$16 sps:$4 sm:$0xff]  }
  0xa5   :  { %1730 = vmatprep.subr.bf16.mxu0 %v2895_v15  ;;  %1894 = vmatprep.subr.bf16.mxu1 %v2898_v16  ;;  %v2982_v15 = vld [vmem:[#allocation5 + $0x428] ss:$16 sps:$4 sm:$0xff]   ;;  %v2987_v16 = vld [vmem:[#allocation5 + $0x444] ss:$16 sps:$4 sm:$0xff]  }
  0xa8   :  { %1731 = vmatpush1.bf16.msra.mxu0 %v2893_v17  ;;  %1895 = vmatpush1.bf16.msra.mxu1 %v2896_v18  ;;  %v2990_v17 = vld [vmem:[#allocation5 + $0x44c] ss:$16 sps:$4 sm:$0xff]   ;;  %v2985_v18 = vld [vmem:[#allocation5 + $0x440] ss:$16 sps:$4 sm:$0xff]  }
  0xa9   :  { %1732 = vmatprep.subr.bf16.mxu0 %v2901_v19  ;;  %1896 = vmatprep.subr.bf16.mxu1 %v2904_v20  ;;  %v2988_v19 = vld [vmem:[#allocation5 + $0x448] ss:$16 sps:$4 sm:$0xff]   ;;  %v2993_v20 = vld [vmem:[#allocation5 + $0x464] ss:$16 sps:$4 sm:$0xff]  }
  0xac   :  { %1733 = vmatpush1.bf16.msra.mxu0 %v2899_v21  ;;  %1897 = vmatpush1.bf16.msra.mxu1 %v2902_v22  ;;  %v2996_v21 = vld [vmem:[#allocation5 + $0x46c] ss:$16 sps:$4 sm:$0xff]   ;;  %v2991_v22 = vld [vmem:[#allocation5 + $0x460] ss:$16 sps:$4 sm:$0xff]  }
  0xad   :  { %1734 = vmatprep.subr.bf16.mxu0 %v2907_v23  ;;  %1898 = vmatprep.subr.bf16.mxu1 %v2910_v24  ;;  %v2994_v23 = vld [vmem:[#allocation5 + $0x468] ss:$16 sps:$4 sm:$0xff]   ;;  %v2999_v24 = vld [vmem:[#allocation5 + $0x484] ss:$16 sps:$4 sm:$0xff]  }
  0xb0   :  { %1735 = vmatpush1.bf16.msra.mxu0 %v2905_v25  ;;  %1899 = vmatpush1.bf16.msra.mxu1 %v2908_v26  ;;  %v3002_v25 = vld [vmem:[#allocation5 + $0x48c] ss:$16 sps:$4 sm:$0xff]   ;;  %v2997_v26 = vld [vmem:[#allocation5 + $0x480] ss:$16 sps:$4 sm:$0xff]  }
  0xb1   :  { %1736 = vmatprep.subr.bf16.mxu0 %v2913_v27  ;;  %1900 = vmatprep.subr.bf16.mxu1 %v2916_v28  ;;  %v3000_v27 = vld [vmem:[#allocation5 + $0x488] ss:$16 sps:$4 sm:$0xff]   ;;  %v3005_v28 = vld [vmem:[#allocation5 + $0x4a4] ss:$16 sps:$4 sm:$0xff]  }
  0xb4   :  { %1737 = vmatpush1.bf16.msra.mxu0 %v2911_v31  ;;  %1901 = vmatpush1.bf16.msra.mxu1 %v2914_v32  ;;  %v3006_v31 = vld [vmem:[#allocation5 + $0x4a8] ss:$16 sps:$4 sm:$0xff]   ;;  %v3011_v32 = vld [vmem:[#allocation5 + $0x4c4] ss:$16 sps:$4 sm:$0xff]  }
  0xb5   :  { %1738 = vmatprep.subr.bf16.mxu0 %v2919_v33  ;;  %1902 = vmatprep.subr.bf16.mxu1 %v2922_v34  ;;  %v3014_v33 = vld [vmem:[#allocation5 + $0x4cc] ss:$16 sps:$4 sm:$0xff]   ;;  %v3009_v34 = vld [vmem:[#allocation5 + $0x4c0] ss:$16 sps:$4 sm:$0xff]  }
  0xb8   :  { %1739 = vmatpush1.bf16.msra.mxu0 %v2917_v35  ;;  %1903 = vmatpush1.bf16.msra.mxu1 %v2920_v36  ;;  %v3012_v35 = vld [vmem:[#allocation5 + $0x4c8] ss:$16 sps:$4 sm:$0xff]   ;;  %v3017_v36 = vld [vmem:[#allocation5 + $0x4e4] ss:$16 sps:$4 sm:$0xff]  }
  0xb9   :  { %1740 = vmatprep.subr.bf16.mxu0 %v2925_v37  ;;  %1904 = vmatprep.subr.bf16.mxu1 %v2928_v38  ;;  %v3020_v37 = vld [vmem:[#allocation5 + $0x4ec] ss:$16 sps:$4 sm:$0xff]   ;;  %v3015_v38 = vld [vmem:[#allocation5 + $0x4e0] ss:$16 sps:$4 sm:$0xff]  }
  0xbc   :  { %1741 = vmatpush1.bf16.msra.mxu0 %v2923_v39  ;;  %1905 = vmatpush1.bf16.msra.mxu1 %v2926_v40  ;;  %v3018_v39 = vld [vmem:[#allocation5 + $0x4e8] ss:$16 sps:$4 sm:$0xff]   ;;  %v3023_v40 = vld [vmem:[#allocation5 + $0x504] ss:$16 sps:$4 sm:$0xff]  }
  0xbd   :  { %1742 = vmatprep.subr.bf16.mxu0 %v2931_v41  ;;  %1906 = vmatprep.subr.bf16.mxu1 %v2934_v42  ;;  %v3026_v41 = vld [vmem:[#allocation5 + $0x50c] ss:$16 sps:$4 sm:$0xff]   ;;  %v3021_v42 = vld [vmem:[#allocation5 + $0x500] ss:$16 sps:$4 sm:$0xff]  }
  0xc0   :  { %1743 = vmatpush1.bf16.msra.mxu0 %v2929_v43  ;;  %1907 = vmatpush1.bf16.msra.mxu1 %v2932_v44  ;;  %v3024_v43 = vld [vmem:[#allocation5 + $0x508] ss:$16 sps:$4 sm:$0xff]   ;;  %v3029_v44 = vld [vmem:[#allocation5 + $0x524] ss:$16 sps:$4 sm:$0xff]  }
  0xc1   :  { %1744 = vmatprep.subr.bf16.mxu0 %v2937_v45  ;;  %1908 = vmatprep.subr.bf16.mxu1 %v2940_v46  ;;  %v3032_v45 = vld [vmem:[#allocation5 + $0x52c] ss:$16 sps:$4 sm:$0xff]   ;;  %v3027_v46 = vld [vmem:[#allocation5 + $0x520] ss:$16 sps:$4 sm:$0xff]  }
  0xc4   :  { %1745 = vmatpush1.bf16.msra.mxu0 %v2935_v47  ;;  %1909 = vmatpush1.bf16.msra.mxu1 %v2938_v48  ;;  %v3030_v47 = vld [vmem:[#allocation5 + $0x528] ss:$16 sps:$4 sm:$0xff]   ;;  %v3035_v48 = vld [vmem:[#allocation5 + $0x544] ss:$16 sps:$4 sm:$0xff]  }
  0xc5   :  { %1746 = vmatprep.subr.bf16.mxu0 %v2943_v49  ;;  %1910 = vmatprep.subr.bf16.mxu1 %v2946_v50  ;;  %v3038_v49 = vld [vmem:[#allocation5 + $0x54c] ss:$16 sps:$4 sm:$0xff]   ;;  %v3033_v50 = vld [vmem:[#allocation5 + $0x540] ss:$16 sps:$4 sm:$0xff]  }
  0xc8   :  { %1747 = vmatpush1.bf16.msra.mxu0 %v2941_v51  ;;  %1911 = vmatpush1.bf16.msra.mxu1 %v2944_v52  ;;  %v3036_v51 = vld [vmem:[#allocation5 + $0x548] ss:$16 sps:$4 sm:$0xff]   ;;  %v3041_v52 = vld [vmem:[#allocation5 + $0x564] ss:$16 sps:$4 sm:$0xff]  }
  0xc9   :  { %1748 = vmatprep.subr.bf16.mxu0 %v2949_v53  ;;  %1912 = vmatprep.subr.bf16.mxu1 %v2952_v54  ;;  %v3044_v53 = vld [vmem:[#allocation5 + $0x56c] ss:$16 sps:$4 sm:$0xff]   ;;  %v3039_v54 = vld [vmem:[#allocation5 + $0x560] ss:$16 sps:$4 sm:$0xff]  }
  0xcc   :  { %1749 = vmatpush1.bf16.msra.mxu0 %v2947_v55  ;;  %1913 = vmatpush1.bf16.msra.mxu1 %v2950_v56  ;;  %v3042_v55 = vld [vmem:[#allocation5 + $0x568] ss:$16 sps:$4 sm:$0xff]   ;;  %v3047_v56 = vld [vmem:[#allocation5 + $0x584] ss:$16 sps:$4 sm:$0xff]  }
  0xcd   :  { %1750 = vmatprep.subr.bf16.mxu0 %v2955_v57  ;;  %1914 = vmatprep.subr.bf16.mxu1 %v2958_v58  ;;  %v3050_v57 = vld [vmem:[#allocation5 + $0x58c] ss:$16 sps:$4 sm:$0xff]   ;;  %v3045_v58 = vld [vmem:[#allocation5 + $0x580] ss:$16 sps:$4 sm:$0xff]  }
  0xd0   :  { %1751 = vmatpush1.bf16.msra.mxu0 %v2953_v59  ;;  %1915 = vmatpush1.bf16.msra.mxu1 %v2956_v60  ;;  %v3048_v59 = vld [vmem:[#allocation5 + $0x588] ss:$16 sps:$4 sm:$0xff]   ;;  %v3053_v60 = vld [vmem:[#allocation5 + $0x5a4] ss:$16 sps:$4 sm:$0xff]  }
  0xd1   :  { %1752 = vmatprep.subr.bf16.mxu0 %v2961_v61  ;;  %1916 = vmatprep.subr.bf16.mxu1 %v2964_v62  ;;  %v3056_v61 = vld [vmem:[#allocation5 + $0x5ac] ss:$16 sps:$4 sm:$0xff]   ;;  %v3051_v62 = vld [vmem:[#allocation5 + $0x5a0] ss:$16 sps:$4 sm:$0xff]  }
  0xd4   :  { %1753 = vmatpush1.bf16.msra.mxu0 %v2959_v63  ;;  %1917 = vmatpush1.bf16.msra.mxu1 %v2962_v0  ;;  %v3054_v63 = vld [vmem:[#allocation5 + $0x5a8] ss:$16 sps:$4 sm:$0xff]   ;;  %v3059_v0 = vld [vmem:[#allocation5 + $0x5c4] ss:$16 sps:$4 sm:$0xff]  }
  0xd5   :  { %1754 = vmatprep.subr.bf16.mxu0 %v2967_v1  ;;  %1918 = vmatprep.subr.bf16.mxu1 %v2970_v2  ;;  %v3062_v1 = vld [vmem:[#allocation5 + $0x5cc] ss:$16 sps:$4 sm:$0xff]   ;;  %v3057_v2 = vld [vmem:[#allocation5 + $0x5c0] ss:$16 sps:$4 sm:$0xff]  }
  0xd8   :  { %1755 = vmatpush1.bf16.msra.mxu0 %v2965_v3  ;;  %1919 = vmatpush1.bf16.msra.mxu1 %v2968_v4  ;;  %v3060_v3 = vld [vmem:[#allocation5 + $0x5c8] ss:$16 sps:$4 sm:$0xff]   ;;  %v3065_v4 = vld [vmem:[#allocation5 + $0x5e4] ss:$16 sps:$4 sm:$0xff]  }
  0xd9   :  { %1765 = vmatprep.subr.bf16.mxu0 %v2975_v5  ;;  %1929 = vmatprep.subr.bf16.mxu1 %v2978_v6  ;;  %v3068_v5 = vld [vmem:[#allocation5 + $0x5ec] ss:$16 sps:$4 sm:$0xff]   ;;  %v3063_v6 = vld [vmem:[#allocation5 + $0x5e0] ss:$16 sps:$4 sm:$0xff]  }
  0xdb   :  { %1757 = vmatmul.mubr.bf16.vlgmr.msra.gmra.mrb[0].mxu0 %v2400_v7  ;;  %1921 = vmatmul.mubr.bf16.vlgmr.msra.gmra.mrb[0].mxu1 %v2400_v7  ;;  %v3066_v7 = vld [vmem:[#allocation5 + $0x5e8] ss:$16 sps:$4 sm:$0xff]  }
  0xdc   :  { %1766 = vmatpush1.bf16.msra.mxu0 %v2973_v8  ;;  %1930 = vmatpush1.bf16.msra.mxu1 %v2976_v9  ;;  %v3073_v8 = vld [vmem:[#allocation5 + $0x604] ss:$16 sps:$4 sm:$0xff]   ;;  %v3076_v9 = vld [vmem:[#allocation5 + $0x60c] ss:$16 sps:$4 sm:$0xff]  }
  0xdd   :  { %1767 = vmatprep.subr.bf16.mxu0 %v2981_v10  ;;  %1931 = vmatprep.subr.bf16.mxu1 %v2984_v12  ;;  %v3071_v10 = vld [vmem:[#allocation5 + $0x600] ss:$16 sps:$4 sm:$0xff]   ;;  %v3074_v12 = vld [vmem:[#allocation5 + $0x608] ss:$16 sps:$4 sm:$0xff]  }
  0xde   :  { %1797 = vmatprep.mubr.bf16.mxu0 %v2403_v13  ;;  %1961 = vmatprep.mubr.bf16.mxu1 %v2403_v13  ;;  %v2402_v13 = vcombine.low %v3462_v11, %v3462_v11  ;;  %v3083_v11 = vld [vmem:[#allocation5 + $0x640] ss:$16 sps:$4 sm:$0xff]  }
  0xe0   :  { %1768 = vmatpush1.bf16.msra.mxu0 %v2979_v14  ;;  %1932 = vmatpush1.bf16.msra.mxu1 %v2982_v15  ;;  %v3079_v14 = vld [vmem:[#allocation5 + $0x624] ss:$16 sps:$4 sm:$0xff]   ;;  %v3468_v15 = vld [vmem:[#allocation2 + $0x18] sm:$0xff] }
  0xe1   :  { %1769 = vmatprep.subr.bf16.mxu0 %v2987_v16  ;;  %1933 = vmatprep.subr.bf16.mxu1 %v2990_v17  ;;  %v3082_v16 = vld [vmem:[#allocation5 + $0x62c] ss:$16 sps:$4 sm:$0xff]   ;;  %v3077_v17 = vld [vmem:[#allocation5 + $0x620] ss:$16 sps:$4 sm:$0xff]  }
  0xe4   :  { %1770 = vmatpush1.bf16.msra.mxu0 %v2985_v18  ;;  %1934 = vmatpush1.bf16.msra.mxu1 %v2988_v19  ;;  %v3080_v18 = vld [vmem:[#allocation5 + $0x628] ss:$16 sps:$4 sm:$0xff]   ;;  %v2405_v19 = vcombine.high %v3468_v15, %v3468_v15 }
  0xe5   :  { %1771 = vmatprep.subr.bf16.mxu0 %v2993_v20  ;;  %1935 = vmatprep.subr.bf16.mxu1 %v2996_v21  ;;  %v3085_v20 = vld [vmem:[#allocation5 + $0x644] ss:$16 sps:$4 sm:$0xff]   ;;  %v3088_v21 = vld [vmem:[#allocation5 + $0x64c] ss:$16 sps:$4 sm:$0xff]  }
  0xe8   :  { %1772 = vmatpush1.bf16.msra.mxu0 %v2991_v22  ;;  %1936 = vmatpush1.bf16.msra.mxu1 %v2994_v23  ;;  %v3086_v22 = vld [vmem:[#allocation5 + $0x648] ss:$16 sps:$4 sm:$0xff]   ;;  %v3091_v23 = vld [vmem:[#allocation5 + $0x664] ss:$16 sps:$4 sm:$0xff]  }
  0xe9   :  { %1773 = vmatprep.subr.bf16.mxu0 %v2999_v24  ;;  %1937 = vmatprep.subr.bf16.mxu1 %v3002_v25  ;;  %v3094_v24 = vld [vmem:[#allocation5 + $0x66c] ss:$16 sps:$4 sm:$0xff]   ;;  %v3089_v25 = vld [vmem:[#allocation5 + $0x660] ss:$16 sps:$4 sm:$0xff]  }
  0xec   :  { %1774 = vmatpush1.bf16.msra.mxu0 %v2997_v26  ;;  %1938 = vmatpush1.bf16.msra.mxu1 %v3000_v27  ;;  %v3092_v26 = vld [vmem:[#allocation5 + $0x668] ss:$16 sps:$4 sm:$0xff]   ;;  %v3097_v27 = vld [vmem:[#allocation5 + $0x684] ss:$16 sps:$4 sm:$0xff]  }
  0xed   :  { %1775 = vmatprep.subr.bf16.mxu0 %v3005_v28  ;;  %1939 = vmatprep.subr.bf16.mxu1 %v3008_v29  ;;  %v3100_v28 = vld [vmem:[#allocation5 + $0x68c] ss:$16 sps:$4 sm:$0xff]   ;;  %v3095_v29 = vld [vmem:[#allocation5 + $0x680] ss:$16 sps:$4 sm:$0xff]  }
  0xf0   :  { %1776 = vmatpush1.bf16.msra.mxu0 %v3003_v30  ;;  %1940 = vmatpush1.bf16.msra.mxu1 %v3006_v31  ;;  %v3098_v30 = vld [vmem:[#allocation5 + $0x688] ss:$16 sps:$4 sm:$0xff]   ;;  %v3103_v31 = vld [vmem:[#allocation5 + $0x6a4] ss:$16 sps:$4 sm:$0xff]  }
  0xf1   :  { %1777 = vmatprep.subr.bf16.mxu0 %v3011_v32  ;;  %1941 = vmatprep.subr.bf16.mxu1 %v3014_v33  ;;  %v3106_v32 = vld [vmem:[#allocation5 + $0x6ac] ss:$16 sps:$4 sm:$0xff]   ;;  %v3101_v33 = vld [vmem:[#allocation5 + $0x6a0] ss:$16 sps:$4 sm:$0xff]  }
  0xf4   :  { %1778 = vmatpush1.bf16.msra.mxu0 %v3009_v34  ;;  %1942 = vmatpush1.bf16.msra.mxu1 %v3012_v35  ;;  %v3104_v34 = vld [vmem:[#allocation5 + $0x6a8] ss:$16 sps:$4 sm:$0xff]   ;;  %v3109_v35 = vld [vmem:[#allocation5 + $0x6c4] ss:$16 sps:$4 sm:$0xff]  }
  0xf5   :  { %1779 = vmatprep.subr.bf16.mxu0 %v3017_v36  ;;  %1943 = vmatprep.subr.bf16.mxu1 %v3020_v37  ;;  %v3112_v36 = vld [vmem:[#allocation5 + $0x6cc] ss:$16 sps:$4 sm:$0xff]   ;;  %v3107_v37 = vld [vmem:[#allocation5 + $0x6c0] ss:$16 sps:$4 sm:$0xff]  }
  0xf8   :  { %1780 = vmatpush1.bf16.msra.mxu0 %v3015_v38  ;;  %1944 = vmatpush1.bf16.msra.mxu1 %v3018_v39  ;;  %v3110_v38 = vld [vmem:[#allocation5 + $0x6c8] ss:$16 sps:$4 sm:$0xff]   ;;  %v3115_v39 = vld [vmem:[#allocation5 + $0x6e4] ss:$16 sps:$4 sm:$0xff]  }
  0xf9   :  { %1781 = vmatprep.subr.bf16.mxu0 %v3023_v40  ;;  %1945 = vmatprep.subr.bf16.mxu1 %v3026_v41  ;;  %v3118_v40 = vld [vmem:[#allocation5 + $0x6ec] ss:$16 sps:$4 sm:$0xff]   ;;  %v3113_v41 = vld [vmem:[#allocation5 + $0x6e0] ss:$16 sps:$4 sm:$0xff]  }
  0xfc   :  { %1782 = vmatpush1.bf16.msra.mxu0 %v3021_v42  ;;  %1946 = vmatpush1.bf16.msra.mxu1 %v3024_v43  ;;  %v3116_v42 = vld [vmem:[#allocation5 + $0x6e8] ss:$16 sps:$4 sm:$0xff]   ;;  %v3121_v43 = vld [vmem:[#allocation5 + $0x704] ss:$16 sps:$4 sm:$0xff]  }
  0xfd   :  { %1783 = vmatprep.subr.bf16.mxu0 %v3029_v44  ;;  %1947 = vmatprep.subr.bf16.mxu1 %v3032_v45  ;;  %v3124_v44 = vld [vmem:[#allocation5 + $0x70c] ss:$16 sps:$4 sm:$0xff]   ;;  %v3119_v45 = vld [vmem:[#allocation5 + $0x700] ss:$16 sps:$4 sm:$0xff]  }
 0x100   :  { %1784 = vmatpush1.bf16.msra.mxu0 %v3027_v46  ;;  %1948 = vmatpush1.bf16.msra.mxu1 %v3030_v47  ;;  %v3122_v46 = vld [vmem:[#allocation5 + $0x708] ss:$16 sps:$4 sm:$0xff]   ;;  %v3127_v47 = vld [vmem:[#allocation5 + $0x724] ss:$16 sps:$4 sm:$0xff]  }
 0x101   :  { %1785 = vmatprep.subr.bf16.mxu0 %v3035_v48  ;;  %1949 = vmatprep.subr.bf16.mxu1 %v3038_v49  ;;  %v3130_v48 = vld [vmem:[#allocation5 + $0x72c] ss:$16 sps:$4 sm:$0xff]   ;;  %v3125_v49 = vld [vmem:[#allocation5 + $0x720] ss:$16 sps:$4 sm:$0xff]  }
 0x104   :  { %1786 = vmatpush1.bf16.msra.mxu0 %v3033_v50  ;;  %1950 = vmatpush1.bf16.msra.mxu1 %v3036_v51  ;;  %v3128_v50 = vld [vmem:[#allocation5 + $0x728] ss:$16 sps:$4 sm:$0xff]   ;;  %v3133_v51 = vld [vmem:[#allocation5 + $0x744] ss:$16 sps:$4 sm:$0xff]  }
 0x105   :  { %1787 = vmatprep.subr.bf16.mxu0 %v3041_v52  ;;  %1951 = vmatprep.subr.bf16.mxu1 %v3044_v53  ;;  %v3136_v52 = vld [vmem:[#allocation5 + $0x74c] ss:$16 sps:$4 sm:$0xff]   ;;  %v3131_v53 = vld [vmem:[#allocation5 + $0x740] ss:$16 sps:$4 sm:$0xff]  }
 0x108   :  { %1788 = vmatpush1.bf16.msra.mxu0 %v3039_v54  ;;  %1952 = vmatpush1.bf16.msra.mxu1 %v3042_v55  ;;  %v3134_v54 = vld [vmem:[#allocation5 + $0x748] ss:$16 sps:$4 sm:$0xff]   ;;  %v3139_v55 = vld [vmem:[#allocation5 + $0x764] ss:$16 sps:$4 sm:$0xff]  }
 0x109   :  { %1789 = vmatprep.subr.bf16.mxu0 %v3047_v56  ;;  %1953 = vmatprep.subr.bf16.mxu1 %v3050_v57  ;;  %v3142_v56 = vld [vmem:[#allocation5 + $0x76c] ss:$16 sps:$4 sm:$0xff]   ;;  %v3137_v57 = vld [vmem:[#allocation5 + $0x760] ss:$16 sps:$4 sm:$0xff]  }
 0x10c   :  { %1790 = vmatpush1.bf16.msra.mxu0 %v3045_v58  ;;  %1954 = vmatpush1.bf16.msra.mxu1 %v3048_v59  ;;  %v3140_v58 = vld [vmem:[#allocation5 + $0x768] ss:$16 sps:$4 sm:$0xff]   ;;  %v3145_v59 = vld [vmem:[#allocation5 + $0x784] ss:$16 sps:$4 sm:$0xff]  }
 0x10d   :  { %1791 = vmatprep.subr.bf16.mxu0 %v3053_v60  ;;  %1955 = vmatprep.subr.bf16.mxu1 %v3056_v61  ;;  %v3148_v60 = vld [vmem:[#allocation5 + $0x78c] ss:$16 sps:$4 sm:$0xff]   ;;  %v3143_v61 = vld [vmem:[#allocation5 + $0x780] ss:$16 sps:$4 sm:$0xff]  }
 0x110   :  { %1792 = vmatpush1.bf16.msra.mxu0 %v3051_v62  ;;  %1956 = vmatpush1.bf16.msra.mxu1 %v3054_v63  ;;  %v3146_v62 = vld [vmem:[#allocation5 + $0x788] ss:$16 sps:$4 sm:$0xff]   ;;  %v3151_v63 = vld [vmem:[#allocation5 + $0x7a4] ss:$16 sps:$4 sm:$0xff]  }
 0x111   :  { %1793 = vmatprep.subr.bf16.mxu0 %v3059_v0  ;;  %1957 = vmatprep.subr.bf16.mxu1 %v3062_v1  ;;  %v3154_v0 = vld [vmem:[#allocation5 + $0x7ac] ss:$16 sps:$4 sm:$0xff]   ;;  %v3149_v1 = vld [vmem:[#allocation5 + $0x7a0] ss:$16 sps:$4 sm:$0xff]  }
 0x114   :  { %1794 = vmatpush1.bf16.msra.mxu0 %v3057_v2  ;;  %1958 = vmatpush1.bf16.msra.mxu1 %v3060_v3  ;;  %v3152_v2 = vld [vmem:[#allocation5 + $0x7a8] ss:$16 sps:$4 sm:$0xff]   ;;  %v3157_v3 = vld [vmem:[#allocation5 + $0x7c4] ss:$16 sps:$4 sm:$0xff]  }
 0x115   :  { %1795 = vmatprep.subr.bf16.mxu0 %v3065_v4  ;;  %1959 = vmatprep.subr.bf16.mxu1 %v3068_v5  ;;  %v3160_v4 = vld [vmem:[#allocation5 + $0x7cc] ss:$16 sps:$4 sm:$0xff]   ;;  %v3155_v5 = vld [vmem:[#allocation5 + $0x7c0] ss:$16 sps:$4 sm:$0xff]  }
 0x118   :  { %1796 = vmatpush1.bf16.msra.mxu0 %v3063_v6  ;;  %1960 = vmatpush1.bf16.msra.mxu1 %v3066_v7  ;;  %v3158_v6 = vld [vmem:[#allocation5 + $0x7c8] ss:$16 sps:$4 sm:$0xff]   ;;  %v3163_v7 = vld [vmem:[#allocation5 + $0x7e4] ss:$16 sps:$4 sm:$0xff]  }
 0x119   :  { %1806 = vmatprep.subr.bf16.mxu0 %v3073_v8  ;;  %1970 = vmatprep.subr.bf16.mxu1 %v3076_v9  ;;  %v3166_v8 = vld [vmem:[#allocation5 + $0x7ec] ss:$16 sps:$4 sm:$0xff]   ;;  %v3161_v9 = vld [vmem:[#allocation5 + $0x7e0] ss:$16 sps:$4 sm:$0xff]  }
 0x11b   :  { %1798 = vmatmul.mubr.bf16.vlgmr.msra.gmra.mrb[0].mxu0 %v2402_v13  ;;  %1962 = vmatmul.mubr.bf16.vlgmr.msra.gmra.mrb[0].mxu1 %v2402_v13  ;;  %v3170_v13 = vld [vmem:[#allocation7 + $0xc0] sm:$0xff]  }
 0x11c   :  { %1807 = vmatpush1.bf16.msra.mxu0 %v3071_v10  ;;  %1971 = vmatpush1.bf16.msra.mxu1 %v3074_v12  ;;  %v3164_v10 = vld [vmem:[#allocation5 + $0x7e8] ss:$16 sps:$4 sm:$0xff]   ;;  %v3169_v12 = vld [vmem:[#allocation7 + $0x40] sm:$0xff]  }
 0x11d   :  { %1808 = vmatprep.subr.bf16.mxu0 %v3079_v14  ;;  %1972 = vmatprep.subr.bf16.mxu1 %v3082_v16  ;;  %v2404_v14 = vcombine.low %v3468_v15, %v3468_v15  ;;  %v3171_v16 = vld [vmem:[#allocation7] sm:$0xff]   ;;  %v3179_v15 = vld [vmem:[#allocation7 + $0x10] sm:$0xff]  }
 0x11e   :  { %1838 = vmatprep.mubr.bf16.mxu0 %v2405_v19  ;;  %2002 = vmatprep.mubr.bf16.mxu1 %v2405_v19  ;;  %v3174_v19 = vld [vmem:[#allocation7 + $0xc8] sm:$0xff]  }
 0x120   :  { %1809 = vmatpush1.bf16.msra.mxu0 %v3077_v17  ;;  %1973 = vmatpush1.bf16.msra.mxu1 %v3080_v18  ;;  %v3172_v17 = vld [vmem:[#allocation7 + $0x80] sm:$0xff]   ;;  %v3173_v18 = vld [vmem:[#allocation7 + $0x48] sm:$0xff]  }
 0x121   :  { %1810 = vmatprep.subr.bf16.mxu0 %v3085_v20  ;;  %1974 = vmatprep.subr.bf16.mxu1 %v3088_v21  ;;  %v3175_v20 = vld [vmem:[#allocation7 + $0x8] sm:$0xff]  }
 0x122   :  { %v3176_v21 = vld [vmem:[#allocation7 + $0x88] sm:$0xff]  }
 0x124   :  { %1811 = vmatpush1.bf16.msra.mxu0 %v3083_v11  ;;  %1975 = vmatpush1.bf16.msra.mxu1 %v3086_v22  ;;  %v3177_v11 = vld [vmem:[#allocation7 + $0x50] sm:$0xff]  }
 0x125   :  { %1812 = vmatprep.subr.bf16.mxu0 %v3091_v23  ;;  %1976 = vmatprep.subr.bf16.mxu1 %v3094_v24  ;;  %v3178_v22 = vld [vmem:[#allocation7 + $0xd0] sm:$0xff]   ;;  %v3181_v24 = vld [vmem:[#allocation7 + $0x58] sm:$0xff]  }
 0x126   :  { %v3180_v23 = vld [vmem:[#allocation7 + $0x90] sm:$0xff]  }
 0x128   :  { %1813 = vmatpush1.bf16.msra.mxu0 %v3089_v25  ;;  %1977 = vmatpush1.bf16.msra.mxu1 %v3092_v26  ;;  %v3182_v25 = vld [vmem:[#allocation7 + $0xd8] sm:$0xff]  }
 0x129   :  { %1814 = vmatprep.subr.bf16.mxu0 %v3097_v27  ;;  %1978 = vmatprep.subr.bf16.mxu1 %v3100_v28  ;;  %v3183_v26 = vld [vmem:[#allocation7 + $0x18] sm:$0xff]   ;;  %v3185_v28 = vld [vmem:[#allocation7 + $0x60] sm:$0xff]  }
 0x12a   :  { %v3184_v27 = vld [vmem:[#allocation7 + $0x98] sm:$0xff]  }
 0x12c   :  { %1815 = vmatpush1.bf16.msra.mxu0 %v3095_v29  ;;  %1979 = vmatpush1.bf16.msra.mxu1 %v3098_v30  ;;  %v3186_v29 = vld [vmem:[#allocation7 + $0xe0] sm:$0xff]  }
 0x12d   :  { %1816 = vmatprep.subr.bf16.mxu0 %v3103_v31  ;;  %1980 = vmatprep.subr.bf16.mxu1 %v3106_v32  ;;  %v3187_v30 = vld [vmem:[#allocation7 + $0x20] sm:$0xff]   ;;  %v3189_v32 = vld [vmem:[#allocation7 + $0x68] sm:$0xff]  }
 0x12e   :  { %v3188_v31 = vld [vmem:[#allocation7 + $0xa0] sm:$0xff]  }
 0x130   :  { %1817 = vmatpush1.bf16.msra.mxu0 %v3101_v33  ;;  %1981 = vmatpush1.bf16.msra.mxu1 %v3104_v34  ;;  %v3190_v33 = vld [vmem:[#allocation7 + $0xe8] sm:$0xff]  }
 0x131   :  { %1818 = vmatprep.subr.bf16.mxu0 %v3109_v35  ;;  %1982 = vmatprep.subr.bf16.mxu1 %v3112_v36  ;;  %v3191_v34 = vld [vmem:[#allocation7 + $0x28] sm:$0xff]   ;;  %v3193_v36 = vld [vmem:[#allocation7 + $0x70] sm:$0xff]  }
 0x132   :  { %v3192_v35 = vld [vmem:[#allocation7 + $0xa8] sm:$0xff]  }
 0x134   :  { %1819 = vmatpush1.bf16.msra.mxu0 %v3107_v37  ;;  %1983 = vmatpush1.bf16.msra.mxu1 %v3110_v38  ;;  %v3194_v37 = vld [vmem:[#allocation7 + $0xf0] sm:$0xff]  }
 0x135   :  { %1820 = vmatprep.subr.bf16.mxu0 %v3115_v39  ;;  %1984 = vmatprep.subr.bf16.mxu1 %v3118_v40  ;;  %v3195_v38 = vld [vmem:[#allocation7 + $0x30] sm:$0xff]   ;;  %v3197_v40 = vld [vmem:[#allocation7 + $0x78] sm:$0xff]  }
 0x136   :  { %v3196_v39 = vld [vmem:[#allocation7 + $0xb0] sm:$0xff]  }
 0x138   :  { %1821 = vmatpush1.bf16.msra.mxu0 %v3113_v41  ;;  %1985 = vmatpush1.bf16.msra.mxu1 %v3116_v42  ;;  %v3198_v41 = vld [vmem:[#allocation7 + $0xf8] sm:$0xff]  }
 0x139   :  { %1822 = vmatprep.subr.bf16.mxu0 %v3121_v43  ;;  %1986 = vmatprep.subr.bf16.mxu1 %v3124_v44  ;;  %v3199_v42 = vld [vmem:[#allocation7 + $0x38] sm:$0xff]   ;;  %v355_v44 = vlaneseq }
 0x13a   :  { %v3200_v43 = vld [vmem:[#allocation7 + $0xb8] sm:$0xff]  }
 0x13c   :  { %1823 = vmatpush1.bf16.msra.mxu0 %v3119_v45  ;;  %1987 = vmatpush1.bf16.msra.mxu1 %v3122_v46  ;;  %v356_v45 = vshrl.u32 %v355_v44, 7 }
 0x13d   :  { %1824 = vmatprep.subr.bf16.mxu0 %v3127_v47  ;;  %1988 = vmatprep.subr.bf16.mxu1 %v3130_v48  ;;  %v353_v48 = vld [vmem:[%s3497_s2] sm:$0xf] }
 0x13e   :  { %v357_v46 = vsub.s32 0, %v356_v45  ;;  %v365_v47 = vsub.s32 2, %v356_v45 }
 0x140   :  { %1825 = vmatpush1.bf16.msra.mxu0 %v3125_v49  ;;  %1989 = vmatpush1.bf16.msra.mxu1 %v3128_v50  ;;  %v361_v49 = vsub.s32 1, %v356_v45  ;;  %v369_v50 = vsub.s32 3, %v356_v45 }
 0x141   :  { %1826 = vmatprep.subr.bf16.mxu0 %v3133_v51  ;;  %1990 = vmatprep.subr.bf16.mxu1 %v3136_v52  ;;  %v358_v51 = vrot.slane %v353_v48, %v357_v46  ;;  %v366_v52 = vrot.slane %v353_v48, %v365_v47 }
 0x144   :  { %1827 = vmatpush1.bf16.msra.mxu0 %v3131_v53  ;;  %1991 = vmatpush1.bf16.msra.mxu1 %v3134_v54  ;;  %v362_v53 = vrot.slane %v353_v48, %v361_v49  ;;  %v370_v54 = vrot.slane %v353_v48, %v369_v50 }
 0x145   :  { %1828 = vmatprep.subr.bf16.mxu0 %v3139_v55  ;;  %1992 = vmatprep.subr.bf16.mxu1 %v3142_v56 }
 0x148   :  { %1829 = vmatpush1.bf16.msra.mxu0 %v3137_v57  ;;  %1993 = vmatpush1.bf16.msra.mxu1 %v3140_v58 }
 0x149   :  { %1830 = vmatprep.subr.bf16.mxu0 %v3145_v59  ;;  %1994 = vmatprep.subr.bf16.mxu1 %v3148_v60 }
 0x14c   :  { %1831 = vmatpush1.bf16.msra.mxu0 %v3143_v61  ;;  %1995 = vmatpush1.bf16.msra.mxu1 %v3146_v62  ;;  %v2015_v61 = vld [vmem:[#allocation8] sm:$0xff]  ;;  %v2017_v62 = vld [vmem:[#allocation8 + $0x10] sm:$0xff] }
 0x14d   :  { %1832 = vmatprep.subr.bf16.mxu0 %v3151_v63  ;;  %1996 = vmatprep.subr.bf16.mxu1 %v3154_v0 }
 0x150   :  { %1833 = vmatpush1.bf16.msra.mxu0 %v3149_v1  ;;  %1997 = vmatpush1.bf16.msra.mxu1 %v3152_v2 }
 0x151   :  { %1834 = vmatprep.subr.bf16.mxu0 %v3157_v3  ;;  %1998 = vmatprep.subr.bf16.mxu1 %v3160_v4 }
 0x154   :  { %1835 = vmatpush1.bf16.msra.mxu0 %v3155_v5  ;;  %1999 = vmatpush1.bf16.msra.mxu1 %v3158_v6  ;;  %v2016_v5 = vld [vmem:[#allocation8 + $0x8] sm:$0xff]  ;;  %v2018_v6 = vld [vmem:[#allocation8 + $0x18] sm:$0xff] }
 0x155   :  { %1836 = vmatprep.subr.bf16.mxu0 %v3163_v7  ;;  %2000 = vmatprep.subr.bf16.mxu1 %v3166_v8 }
 0x158   :  { %1837 = vmatpush1.bf16.msra.mxu0 %v3161_v9  ;;  %2001 = vmatpush1.bf16.msra.mxu1 %v3164_v10  ;;  %v2023_v9 = vld [vmem:[#allocation10] sm:$0xff]  ;;  %v2025_v10 = vld [vmem:[#allocation10 + $0x10] sm:$0xff] }
 0x159   :  { %2695 = vmatprep.subr.bf16.mxu0 %v3169_v12  ;;  %2717 = vmatprep.subr.bf16.mxu1 %v3170_v13 }
 0x15b   :  { %1839 = vmatmul.mubr.bf16.vlgmr.msra.gmra.mrb[0].mxu0 %v2404_v14  ;;  %2003 = vmatmul.mubr.bf16.vlgmr.msra.gmra.mrb[0].mxu1 %v2404_v14 }
 0x15c   :  { %2696 = vmatpush3.bf16.msra.mxu0 %v3171_v16  ;;  %2718 = vmatpush3.bf16.msra.mxu1 %v3172_v17  ;;  %v2024_v17 = vld [vmem:[#allocation10 + $0x8] sm:$0xff] }
 0x15d   :  { %2697 = vmatprep.subr.bf16.mxu0 %v3173_v18  ;;  %2719 = vmatprep.subr.bf16.mxu1 %v3174_v19  ;;  %v2026_v18 = vld [vmem:[#allocation10 + $0x18] sm:$0xff] }
 0x160   :  { %2698 = vmatpush3.bf16.msra.mxu0 %v3175_v20  ;;  %2720 = vmatpush3.bf16.msra.mxu1 %v3176_v21 }
 0x161   :  { %2699 = vmatprep.subr.bf16.mxu0 %v3177_v11  ;;  %2721 = vmatprep.subr.bf16.mxu1 %v3178_v22 }
 0x164   :  { %2700 = vmatpush3.bf16.msra.mxu0 %v3179_v15  ;;  %2722 = vmatpush3.bf16.msra.mxu1 %v3180_v23 }
 0x165   :  { %2701 = vmatprep.subr.bf16.mxu0 %v3181_v24  ;;  %2723 = vmatprep.subr.bf16.mxu1 %v3182_v25 }
 0x168   :  { %2702 = vmatpush3.bf16.msra.mxu0 %v3183_v26  ;;  %2724 = vmatpush3.bf16.msra.mxu1 %v3184_v27 }
 0x169   :  { %2703 = vmatprep.subr.bf16.mxu0 %v3185_v28  ;;  %2725 = vmatprep.subr.bf16.mxu1 %v3186_v29  ;;  %v2662_v29 = vld [vmem:[%s3499_s4] ss:$0 sm:$0xff]  ;;  %s3311_s4 = scalar_lea.vmem %s2388_s25, 128 }
 0x16a   :  { %p3312_p12 = scmp.ne.s32.totalorder %s2388_s25, %s3311_s4  ;;  %p3317_p0 = scmp.lt.s32.totalorder %s3311_s4, %s3311_s4 }
 0x16c   :  { %2704 = vmatpush3.bf16.msra.mxu0 %v3187_v30  ;;  %2726 = vmatpush3.bf16.msra.mxu1 %v3188_v31  ;;  %p3318_p1 = por %p3317_p0, %p3316_p13 }
 0x16d   :  { %2705 = vmatprep.subr.bf16.mxu0 %v3189_v32  ;;  %2727 = vmatprep.subr.bf16.mxu1 %v3190_v33 }
 0x16e   :  { %p3319_p2 = pnand %p3318_p1, %p3312_p12 }
 0x170   :  { %2706 = vmatpush3.bf16.msra.mxu0 %v3191_v34  ;;  %2728 = vmatpush3.bf16.msra.mxu1 %v3192_v35 }
 0x171   :  { %2707 = vmatprep.subr.bf16.mxu0 %v3193_v36  ;;  %2729 = vmatprep.subr.bf16.mxu1 %v3194_v37 }
 0x174   :  { %2708 = vmatpush3.bf16.msra.mxu0 %v3195_v38  ;;  %2730 = vmatpush3.bf16.msra.mxu1 %v3196_v39  ;;  %v2378_v39 = vld [vmem:[%s3502_s7] sm:$0xff] }
 0x175   :  { %2709 = vmatprep.subr.bf16.mxu0 %v3197_v40  ;;  %2731 = vmatprep.subr.bf16.mxu1 %v3198_v41 }
 0x178   :  { %2710 = vmatpush3.bf16.msra.mxu0 %v3199_v42  ;;  %2732 = vmatpush3.bf16.msra.mxu1 %v3200_v43 }
 0x22e   :  { %v1840_v55 = vpop.f32.mrb[0].mxu0  ;;  %v2004_v56 = vpop.f32.mrb[0].mxu1 }
 0x22f   :  { %v2739_v57 = vadd.f32 %v1840_v55, %v358_v51  ;;  %v2741_v58 = vadd.f32 %v2004_v56, %v366_v52  ;;  %v1842_v59 = vpop.f32.mrb[1].mxu0  ;;  %v2006_v60 = vpop.f32.mrb[1].mxu1 }
 0x230   :  { %v2740_v63 = vadd.f32 %v1842_v59, %v362_v53  ;;  %v2742_v0 = vadd.f32 %v2006_v60, %v370_v54  ;;  %v1844_v1 = vpop.f32.mrb[2].mxu0  ;;  %v2008_v2 = vpop.f32.mrb[2].mxu1 }
 0x231   :  { %v2011_v3 = vmax.f32 %v2739_v57, 0.0  ;;  %v2013_v4 = vmax.f32 %v2741_v58, 0.0  ;;  %v1845_v7 = vpop.f32.mrb[3].mxu0  ;;  %v2009_v8 = vpop.f32.mrb[3].mxu1 }
 0x232   :  { %v2012_v12 = vmax.f32 %v2740_v63, 0.0  ;;  %v2014_v13 = vmax.f32 %v2742_v0, 0.0 }
 0x233   :  { %v2019_v14 = vmul.f32 %v2015_v61, %v2011_v3  ;;  %v2021_v16 = vmul.f32 %v2017_v62, %v2013_v4 }
 0x234   :  { %v2020_v19 = vmul.f32 %v2016_v5, %v2012_v12  ;;  %v2022_v20 = vmul.f32 %v2018_v6, %v2014_v13 }
 0x235   :  { %v2027_v21 = vadd.f32 %v2023_v9, %v2019_v14  ;;  %v2029_v11 = vadd.f32 %v2025_v10, %v2021_v16 }
 0x236   :  { %v2028_v22 = vadd.f32 %v2024_v17, %v2020_v19  ;;  %v2030_v15 = vadd.f32 %v2026_v18, %v2022_v20 }
 0x237   :  { %v2031_v25 = vpack.c.bf16 %v2027_v21, %v2027_v21  ;;  %v2033_v26 = vpack.c.bf16 %v2029_v11, %v2029_v11 }
 0x238   :  { %v2032_v23 = vpack.c.bf16 %v2028_v22, %v2028_v22  ;;  %v2034_v24 = vpack.c.bf16 %v2030_v15, %v2030_v15 }
 0x23a   :  { %2330 = vmatprep.mubr.bf16.mxu0 %v2032_v23  ;;  %2370 = vmatprep.mubr.bf16.mxu1 %v2034_v24 }
 0x23b   :  { %2331 = vmatmul.mubr.bf16.vlgmr.msra.gmra.mrb[4].mxu0 %v2031_v25  ;;  %2371 = vmatmul.mubr.bf16.vlgmr.msra.gmra.mrb[4].mxu1 %v2033_v26 }
 0x30e   :  { %v2711_v27 = vpop.f32.mrb[4].mxu0  ;;  %v2733_v28 = vpop.f32.mrb[4].mxu1 }
 0x30f   :  { %v2712_v30 = vpop.f32.mrb[5].mxu0  ;;  %v2734_v31 = vpop.f32.mrb[5].mxu1 }
 0x310   :  { %v2713_v32 = vadd.f32 %v2712_v30, %v2711_v27  ;;  %v2735_v33 = vadd.f32 %v2734_v31, %v2733_v28  ;;  %v2714_v34 = vpop.f32.mrb[6].mxu0  ;;  %v2736_v35 = vpop.f32.mrb[6].mxu1 }
 0x311   :  { %v2715_v36 = vpop.f32.mrb[7].mxu0  ;;  %v2737_v37 = vpop.f32.mrb[7].mxu1 }
 0x312   :  { %v2333_v38 = vadd.f32 %v2713_v32, %v2662_v29 }
 0x314   :  { %v2373_v40 = vadd.f32 %v2735_v33, %v2333_v38 }
 0x316   :  { %v2379_v41 = vmul.f32 %v2378_v39, %v2373_v40 }
 0x318   :  { %2380 = vst [vmem:[#allocation11] sm:$0xff] %v2379_v41 }
 0x319   :  { %3322 = shalt.err (!%p3319_p2)
}
 0x31a   :  { %s3323_s29 = scalar_lea.hbm %s3503_s8, 128 }
 0x31b   :  { %p3324_p3 = scmp.ne.s32.totalorder %s3503_s8, %s3323_s29  ;;  %p3327_p4 = scmp.lt.u32.totalorder %s3323_s29, %s3503_s8 }
 0x31d   :  { %p3329_p5 = pnand %p3327_p4, %p3324_p3 }
 0x31f   :  { %3332 = shalt.err (!%p3329_p5)
}
 0x320   :  { %2390 = dma.vmem_to_hbm [thread:$0]  %s2388_s25, 128, %s3503_s8, [#allocation4]  }
 0x321   :  { %3339 = dma.done.wait [#allocation4], 128  }
 0x322   :  { %3340 = vsyncadd [#allocation4], 4294967168 }
 0x323   :  { %2394 = vsyncpa [#allocation3], 1 }
 0x324   :  { %2395 = vsyncpa [#allocation6], 1 }
 0x325   :  { %2396 = vsyncpa [#allocation9], 1 }
 0x326   :  { %2397 = vsyncpa [#allocation4], 1 }

</bundles_post_ra>
